<compile_context>
chip_gen: v7x
topology: tpu7x:2x2x1
jax: 0.10.0
libtpu: 0.0.40
codegen_flags: <defaults>
</compile_context>

<pallas_src>
import jax
import jax.numpy as jnp
from jax.experimental import pallas as pl
from jax.experimental.pallas import tpu as pltpu


def _mlp_kernel(x_ref, w1_ref, b1_ref, w2_ref, b2_ref, o_ref):
    # Fused Linear -> Sigmoid -> Linear on one batch tile, all in VMEM.
    x = x_ref[...]                                       # (TB, F) float32
    h = jnp.dot(x, w1_ref[...],
                preferred_element_type=jnp.float32)      # (TB, H)   MXU
    h = h + b1_ref[...]                                  # VALU, broadcast (1,H)
    h = jax.nn.sigmoid(h)                                # EUP elementwise
    y = jnp.dot(h, w2_ref[...],
                preferred_element_type=jnp.float32)      # (TB, O_pad) MXU
    o_ref[...] = y + b2_ref[...]                         # lane-dense store


def _round_up(n, m):
    return ((n + m - 1) // m) * m


def mlp_forward(x, w1, b1, w2, b2, *, block_b=512):
    """x: (B, F); w1: (F, H); b1: (1, H); w2: (H, O); b2: (1, O)."""
    B, F = x.shape
    H = w1.shape[1]
    O = w2.shape[1]

    # Lane-dense output: pad the narrow output feature dim up to a multiple of
    # 128 (zero columns) so the kernel's stores are unmasked; slice outside.
    o_pad = _round_up(O, 128)
    w2_p = jnp.zeros((H, o_pad), w2.dtype).at[:, :O].set(w2)
    b2_p = jnp.zeros((1, o_pad), b2.dtype).at[:, :O].set(b2)

    # Batch tile: 512 rows for large batches (near HBM roofline), but never
    # larger than the (8-row aligned) batch itself for tiny inputs.
    tb = min(block_b, _round_up(B, 8))
    b_pad = _round_up(B, tb)
    if b_pad != B:
        x = jnp.zeros((b_pad, F), x.dtype).at[:B].set(x)

    out = pl.pallas_call(
        _mlp_kernel,
        out_shape=jax.ShapeDtypeStruct((b_pad, o_pad), jnp.float32),
        grid=(b_pad // tb,),
        in_specs=[
            pl.BlockSpec((tb, F), lambda i: (i, 0)),        # streamed batch tile
            pl.BlockSpec((F, H), lambda i: (0, 0)),         # VMEM-resident
            pl.BlockSpec((1, H), lambda i: (0, 0)),         # VMEM-resident
            pl.BlockSpec((H, o_pad), lambda i: (0, 0)),     # VMEM-resident
            pl.BlockSpec((1, o_pad), lambda i: (0, 0)),     # VMEM-resident
        ],
        out_specs=pl.BlockSpec((tb, o_pad), lambda i: (i, 0)),
        compiler_params=pltpu.CompilerParams(
            dimension_semantics=("parallel",)),             # 2 TCs on v7x
    )(x, w1, b1, w2_p, b2_p)

    return out[:B, :O]


if __name__ == "__main__":
    # Shapes implied by the module (Iris-style classification):
    #   input_size = 4, hidden_size = 16, output_size = 3, small batch = 8
    input_size, hidden_size, output_size, batch = 4, 16, 3, 8

    key = jax.random.PRNGKey(0)
    kx, kw1, kb1, kw2, kb2 = jax.random.split(key, 5)

    x = jax.random.normal(kx, (batch, input_size), dtype=jnp.float32)

    # Deterministic param init (Kaiming-uniform-ish bounds like nn.Linear).
    bound1 = 1.0 / jnp.sqrt(input_size)
    w1 = jax.random.uniform(kw1, (input_size, hidden_size),
                            minval=-bound1, maxval=bound1, dtype=jnp.float32)
    b1 = jax.random.uniform(kb1, (1, hidden_size),
                            minval=-bound1, maxval=bound1, dtype=jnp.float32)

    bound2 = 1.0 / jnp.sqrt(hidden_size)
    w2 = jax.random.uniform(kw2, (hidden_size, output_size),
                            minval=-bound2, maxval=bound2, dtype=jnp.float32)
    b2 = jax.random.uniform(kb2, (1, output_size),
                            minval=-bound2, maxval=bound2, dtype=jnp.float32)

    out = mlp_forward(x, w1, b1, w2, b2)
    out = jax.block_until_ready(out)

    # Reference check in plain JAX (same math as the PyTorch module).
    ref = jax.nn.sigmoid(x @ w1 + b1) @ w2 + b2
    assert out.shape == (batch, output_size)
    assert jnp.allclose(out, ref, atol=1e-5, rtol=1e-5)

    print("KERNEL_OK")
</pallas_src>

<mosaic_0001>
module attributes {stable_mosaic.version = 11 : i64} {
  func.func @_mlp_kernel(%arg0: i32, %arg1: memref<8x4xf32, #tpu.memory_space<vmem>>, %arg2: memref<4x16xf32, #tpu.memory_space<vmem>>, %arg3: memref<1x16xf32, #tpu.memory_space<vmem>>, %arg4: memref<16x128xf32, #tpu.memory_space<vmem>>, %arg5: memref<1x128xf32, #tpu.memory_space<vmem>>, %arg6: memref<8x128xf32, #tpu.memory_space<vmem>>) attributes {dimension_semantics = [#tpu.dimension_semantics<parallel>], iteration_bounds = array<i64: 1>, scalar_prefetch = 0 : i64, scratch_operands = 0 : i64, tpu.core_type = #tpu.core_type<tc>, window_params = [{transform_indices = @transform_0, window_bounds = array<i64: 8, 4>}, {pipeline_mode = #tpu.pipeline_mode<synchronous>, transform_indices = @transform_1, window_bounds = array<i64: 4, 16>}, {pipeline_mode = #tpu.pipeline_mode<synchronous>, transform_indices = @transform_2, window_bounds = array<i64: 1, 16>}, {pipeline_mode = #tpu.pipeline_mode<synchronous>, transform_indices = @transform_3, window_bounds = array<i64: 16, 128>}, {pipeline_mode = #tpu.pipeline_mode<synchronous>, transform_indices = @transform_4, window_bounds = array<i64: 1, 128>}, {transform_indices = @transform_5, window_bounds = array<i64: 8, 128>}]} {
    %c0 = arith.constant 0 : index
    %c0_0 = arith.constant 0 : index
    %0 = vector.load %arg1[%c0, %c0_0] : memref<8x4xf32, #tpu.memory_space<vmem>>, vector<8x4xf32>
    %c0_1 = arith.constant 0 : index
    %c0_2 = arith.constant 0 : index
    %1 = vector.load %arg2[%c0_1, %c0_2] : memref<4x16xf32, #tpu.memory_space<vmem>>, vector<4x16xf32>
    %cst = arith.constant dense<0.000000e+00> : vector<8x16xf32>
    %2 = tpu.matmul %0, %1, %cst {dimension_numbers = #tpu.dot_dimension_numbers<[1], [0], [0], [1], [0, 0, 1, 1], [], []>} : vector<8x4xf32>, vector<4x16xf32>, vector<8x16xf32> -> vector<8x16xf32>
    %c0_3 = arith.constant 0 : index
    %c0_4 = arith.constant 0 : index
    %3 = vector.load %arg3[%c0_3, %c0_4] : memref<1x16xf32, #tpu.memory_space<vmem>>, vector<1x16xf32>
    %4 = vector.broadcast %3 : vector<1x16xf32> to vector<8x16xf32>
    %5 = arith.addf %2, %4 : vector<8x16xf32>
    %6 = arith.negf %5 : vector<8x16xf32>
    %7 = math.exp %6 : vector<8x16xf32>
    %cst_5 = arith.constant 1.000000e+00 : f32
    %8 = vector.broadcast %cst_5 : f32 to vector<8x16xf32>
    %9 = arith.addf %8, %7 : vector<8x16xf32>
    %10 = arith.divf %8, %9 : vector<8x16xf32>
    %c0_6 = arith.constant 0 : index
    %c0_7 = arith.constant 0 : index
    %11 = vector.load %arg4[%c0_6, %c0_7] : memref<16x128xf32, #tpu.memory_space<vmem>>, vector<16x128xf32>
    %cst_8 = arith.constant dense<0.000000e+00> : vector<8x128xf32>
    %12 = tpu.matmul %10, %11, %cst_8 {dimension_numbers = #tpu.dot_dimension_numbers<[1], [0], [0], [1], [0, 0, 1, 1], [], []>} : vector<8x16xf32>, vector<16x128xf32>, vector<8x128xf32> -> vector<8x128xf32>
    %c0_9 = arith.constant 0 : index
    %c0_10 = arith.constant 0 : index
    %13 = vector.load %arg5[%c0_9, %c0_10] : memref<1x128xf32, #tpu.memory_space<vmem>>, vector<1x128xf32>
    %14 = vector.broadcast %13 : vector<1x128xf32> to vector<8x128xf32>
    %15 = arith.addf %12, %14 : vector<8x128xf32>
    %c0_11 = arith.constant 0 : index
    %c0_12 = arith.constant 0 : index
    %16 = vector.load %arg6[%c0_11, %c0_12] : memref<8x128xf32, #tpu.memory_space<vmem>>, vector<8x128xf32>
    tpu.vector_store %arg6[%c0_11, %c0_12], %15 {strides = array<i32>} : memref<8x128xf32, #tpu.memory_space<vmem>>, vector<8x128xf32>,
    return
  }
  func.func @transform_0(%arg0: i32) -> (i32, i32) {
    %c0_i32 = arith.constant 0 : i32
    %c0_i32_0 = arith.constant 0 : i32
    return %arg0, %c0_i32 : i32, i32
  }
  func.func @transform_1(%arg0: i32) -> (i32, i32) {
    %c0_i32 = arith.constant 0 : i32
    %c0_i32_0 = arith.constant 0 : i32
    %c0_i32_1 = arith.constant 0 : i32
    return %c0_i32, %c0_i32_0 : i32, i32
  }
  func.func @transform_2(%arg0: i32) -> (i32, i32) {
    %c0_i32 = arith.constant 0 : i32
    %c0_i32_0 = arith.constant 0 : i32
    %c0_i32_1 = arith.constant 0 : i32
    return %c0_i32, %c0_i32_0 : i32, i32
  }
  func.func @transform_3(%arg0: i32) -> (i32, i32) {
    %c0_i32 = arith.constant 0 : i32
    %c0_i32_0 = arith.constant 0 : i32
    %c0_i32_1 = arith.constant 0 : i32
    return %c0_i32, %c0_i32_0 : i32, i32
  }
  func.func @transform_4(%arg0: i32) -> (i32, i32) {
    %c0_i32 = arith.constant 0 : i32
    %c0_i32_0 = arith.constant 0 : i32
    %c0_i32_1 = arith.constant 0 : i32
    return %c0_i32, %c0_i32_0 : i32, i32
  }
  func.func @transform_5(%arg0: i32) -> (i32, i32) {
    %c0_i32 = arith.constant 0 : i32
    %c0_i32_0 = arith.constant 0 : i32
    return %arg0, %c0_i32 : i32, i32
  }
}

</mosaic_0001>

<bundles_post_ra>
// kernel: tpu_custom_call.1
= control target key start
LH: loop header
LB: loop body
LE: loop exit
PB: predicated region body
PF: predicated region fallthrough
CT: control target
= control target key end

     0   :  { %vm34_vm0 = vcmask 1043456   ;;  %v270_v2 = vmov 0.0   ;;  %vm271_vm1 = vmmov 0   ;;  %vm30_vm2 = vcmask 31744   ;;  %s334_s0 = inlined_call_operand.vmem [shape: f32[8,4], index: 0, kind: input, shape index: {}]   ;;  %s335_s1 = inlined_call_operand.vmem [shape: f32[4,16], index: 1, kind: input, shape index: {}]   ;;  %s336_s2 = inlined_call_operand.vmem [shape: f32[1,16], index: 2, kind: input, shape index: {}]   ;;  %s337_s3 = inlined_call_operand.vmem [shape: f32[16,128], index: 3, kind: input, shape index: {}]   ;;  %s338_s4 = inlined_call_operand.vmem [shape: f32[1,128], index: 4, kind: input, shape index: {}]   ;;  %s339_s5 = inlined_call_operand.hbm [shape: f32[8,128], index: 5, kind: output, shape index: {}]  }
   0x1   :  { %v22_v0 = vld [vmem:[%s335_s1] sm:$0xf]  ;;  %223 = vmatprep.subr.mxu0 %v270_v2  ;;  %225 = vmatprep.mubr.msk.f32.mxu0 %vm271_vm1, %v270_v2 }
   0x2   :  { %v21_v1 = vld [vmem:[%s334_s0] sm:$0xff] }
   0x3   :  { %10 = vsyncpa [#allocation3], 0  ;;  %224 = vmatpush3.msk.msra.mxu0 %vm34_vm0, %v22_v0  ;;  %232 = vmatprep.mubr.msk.f32.mxu1 %vm271_vm1, %v270_v2  ;;  %v114_v3 = vld [vmem:[%s337_s3] sm:$0xff]  ;;  %v115_v4 = vld [vmem:[%s337_s3 + $0x8] sm:$0xff]  ;;  %v272_v5 = vmov 0.0|0.0   ;;  %vm123_vm3 = vcmask 130048  }
   0x4   :  { %226 = vmatmul.mubr.msk.f32.vlgmr.msra.gmra.mrb[0].mxu0 %vm30_vm2, %v21_v1  ;;  %235 = vmatprep.subr.bf16.mxu1 %v272_v5  ;;  %v236_v6 = vpack.c.bf16 %v115_v4, %v114_v3  ;;  %v212_v7 = vld [vmem:[%s336_s2] ss:$0 sm:$0xff]  ;;  %s273_s27 = smov [#allocation2]  }
   0x5   :  { %v216_v15 = vld [vmem:[%s338_s4] ss:$0 sm:$0xff]  ;;  %s204_s28 = sshll.u32 %s273_s27, 4  ;;  %s205_s28 = int_to_ptr.vmem [resolvable:$true] %s204_s28 }
   0x6   :  { %237 = vmatpush3.bf16.msra.mxu1 %v236_v6  ;;  %s246_s2 = scalar_lea.vmem %s205_s28, 128  ;;  %p251_p1 = scmp.lt.s32.totalorder %s205_s28, %s205_s28 }
   0x7   :  { %p247_p0 = scmp.ne.s32.totalorder %s205_s28, %s246_s2  ;;  %p252_p2 = scmp.lt.s32.totalorder %s246_s2, %s246_s2 }
   0x9   :  { %p253_p3 = por %p252_p2, %p251_p1 }
   0xb   :  { %p254_p4 = pnand %p253_p3, %p247_p0 }
  0xd7   :  { %v104_v8 = vpop.f32.mrb[0].mxu0 }
  0xd8   :  { %v105_v9 = vadd.f32 %v212_v7, %v104_v8  ;;  %v227_v10 = vpop.f32.mrb[1].mxu0 }
  0xda   :  { %v215_v11 = vmul.f32 -1.442695, %v105_v9 }
  0xdc   :  { %242 = vpow2.f32 %v215_v11 }
  0xe6   :  { %v243_v12 = vpop.eup %242 }
  0xe7   :  { %v111_v13 = vadd.f32 1.0, %v243_v12 }
  0xe9   :  { %244 = vrcp.f32 %v111_v13 }
  0xf3   :  { %v245_v14 = vpop.eup %244 }
  0xf4   :  { %233 = vmatmul.mubr.msk.f32.vlgmr.msra.gmra.mrb[0].mxu1 %vm123_vm3, %v245_v14 }
 0x1c7   :  { %v193_v16 = vpop.f32.mrb[0].mxu1 }
 0x1c8   :  { %v194_v17 = vadd.f32 %v216_v15, %v193_v16  ;;  %v234_v18 = vpop.f32.mrb[1].mxu1 }
 0x1ca   :  { %197 = vst [vmem:[#allocation2] sm:$0xff] %v194_v17 }
 0x1cb   :  { %257 = shalt.err (!%p254_p4)
}
 0x1cc   :  { %s258_s6 = scalar_lea.hbm %s339_s5, 128 }
 0x1cd   :  { %p259_p5 = scmp.ne.s32.totalorder %s339_s5, %s258_s6  ;;  %p262_p6 = scmp.lt.u32.totalorder %s258_s6, %s339_s5 }
 0x1cf   :  { %p264_p7 = pnand %p262_p6, %p259_p5 }
 0x1d1   :  { %267 = shalt.err (!%p264_p7)
}
 0x1d2   :  { %207 = dma.vmem_to_hbm [thread:$0]  %s205_s28, 128, %s339_s5, [#allocation3]  }
 0x1d3   :  { %268 = dma.done.wait [#allocation3], 128  }
 0x1d4   :  { %269 = vsyncadd [#allocation3], 4294967168 }
 0x1d5   :  { %211 = vsyncpa [#allocation3], 1 }

</bundles_post_ra>
